<compile_context>
chip_gen: v5e
topology: v5e:2x2
jax: 0.10.0
libtpu: 0.0.40
codegen_flags: <defaults>
</compile_context>

<pallas_src>
import math

import jax
import jax.numpy as jnp
from jax.experimental import pallas as pl
from jax.experimental.pallas import tpu as pltpu


def _round_up(x, m):
    return ((x + m - 1) // m) * m


def build_block_csr(adj, tm, tk):
    """Per-graph block-sparsity metadata for graph_convolution.

    Returns (cols_flat, counts, max_nnz):
      cols_flat : int32 (num_i * max_nnz,)  nonzero block-column ids per block
                  row, padded with the last valid id (0 if the row is empty)
                  so padded grid steps re-target an already-resident block.
      counts    : int32 (num_i,)            number of nonzero blocks per row.
      max_nnz   : python int                static grid extent (reduction axis).

    Compute this ONCE per graph (it re-reads the full adjacency) and reuse it
    across layers / time steps; the same (tm, tk) must be used for the kernel.
    """
    N = adj.shape[0]
    num_i, num_k = N // tm, N // tk
    nz = jnp.any(adj.reshape(num_i, tm, num_k, tk) != 0, axis=(1, 3))  # bool (num_i, num_k)
    counts = jnp.sum(nz, axis=1).astype(jnp.int32)                     # (num_i,)
    # Stable ascending argsort of (~nz) puts nonzero block columns first, in order.
    cols = jnp.argsort(~nz, axis=1).astype(jnp.int32)                  # (num_i, num_k)
    k_idx = jnp.arange(num_k, dtype=jnp.int32)[None, :]
    last_valid = jnp.take_along_axis(
        cols, jnp.maximum(counts - 1, 0)[:, None], axis=1)             # (num_i, 1)
    last_valid = jnp.where(counts[:, None] > 0, last_valid, 0)
    cols = jnp.where(k_idx < counts[:, None], cols, last_valid)
    # Static grid extent -> requires a concrete adj (per-graph precompute).
    max_nnz = max(1, int(jax.device_get(jnp.max(counts))))
    cols_flat = cols[:, :max_nnz].reshape(-1)
    return cols_flat, counts, max_nnz


def graph_convolution(x, adj, weight, bias, *, tm=1024, tk=1024,
                      compute_dtype=jnp.bfloat16, block_csr=None):
    """x: (N, F_in), adj: (N, N) dense, weight: (F_out, F_in), bias: (F_out,).

    compute_dtype: MXU operand dtype (bf16 default; pass jnp.float32 for full
    f32 fidelity).  block_csr: optional precomputed build_block_csr(adj, tm, tk).
    """
    N, f_in = x.shape
    f_out = weight.shape[0]

    tm = min(tm, N)
    tk = min(tk, N)
    # Keep >= 2 row blocks so the 'parallel' i axis can shard across both
    # v7x TensorCores (and megacore on v5e/v6e does not degenerate).
    if N // tm < 2 and N % 2 == 0 and (N // 2) % 8 == 0:
        tm = N // 2
    assert N % tm == 0 and N % tk == 0, "N must be divisible by tile sizes"
    # TODO(synk): general N needs cdiv grids + masking / N padding.
    assert tm % 8 == 0 and (tk % 128 == 0 or tk == N), \
        "adj tile must satisfy the (8, 128) layout constraint"

    # --- support = x @ W^T + b, computed once (tiny GEMM, plain XLA). ---------
    support = (x.astype(jnp.float32) @ weight.T.astype(jnp.float32)
               + bias.astype(jnp.float32)[None, :])

    # Lane-dense output: pad F_out only to the next multiple of 128.
    f_out_p = max(128, _round_up(f_out, 128))
    if f_out_p != f_out:
        support = jnp.pad(support, ((0, 0), (0, f_out_p - f_out)))
    support_c = support.astype(compute_dtype)

    # --- per-graph block-CSR (amortize by passing it in across calls). --------
    if block_csr is None:
        block_csr = build_block_csr(adj, tm, tk)
    cols_flat, counts, max_nnz = block_csr

    num_i = N // tm
    assert counts.shape == (num_i,) and cols_flat.shape == (num_i * max_nnz,), \
        "block_csr was built with a different (tm, tk); rebuild with build_block_csr"

    out_dtype = x.dtype
    sup_isz = jnp.dtype(compute_dtype).itemsize
    adj_isz = jnp.dtype(adj.dtype).itemsize
    out_isz = jnp.dtype(out_dtype).itemsize

    # Whole support table VMEM-resident when small; else block-stream it with
    # the same data-dependent gather as adj (padded steps re-hit resident blocks).
    support_resident = 2 * N * f_out_p * sup_isz <= 8 * 1024 * 1024

    def kernel(cols_ref, counts_ref, support_ref, adj_ref, out_ref, acc_ref):
        i = pl.program_id(0)
        k = pl.program_id(1)

        @pl.when(k == 0)
        def _():
            acc_ref[...] = jnp.zeros_like(acc_ref)

        # Only real (nonzero) adjacency blocks contribute; padded steps point
        # at an already-resident block (no DMA) and skip the MXU work here.
        @pl.when(k < counts_ref[i])
        def _():
            if support_resident:
                col = cols_ref[i * max_nnz + k]
                start = pl.multiple_of(col * tk, tk)
                sup = support_ref[pl.ds(start, tk), :]
            else:
                sup = support_ref[...]
            acc_ref[...] += jnp.dot(adj_ref[...].astype(compute_dtype), sup,
                                    preferred_element_type=jnp.float32)

        # k is the innermost 'arbitrary' axis and out_spec ignores it, so the
        # accumulator is finalized exactly once per row block.
        @pl.when(k == pl.num_programs(1) - 1)
        def _():
            out_ref[...] = jnp.tanh(acc_ref[...]).astype(out_ref.dtype)

    if support_resident:
        sup_spec = pl.BlockSpec((N, f_out_p), lambda i, k, cols, cnts: (0, 0))
        sup_vmem = 2 * N * f_out_p * sup_isz
    else:
        sup_spec = pl.BlockSpec(
            (tk, f_out_p), lambda i, k, cols, cnts: (cols[i * max_nnz + k], 0))
        sup_vmem = 2 * tk * f_out_p * sup_isz

    vmem_needed = (2 * tm * tk * adj_isz            # adj double buffer
                   + sup_vmem                        # support
                   + 2 * tm * f_out_p * out_isz      # output tile
                   + tm * f_out_p * 4)               # f32 accumulator scratch
    vmem_limit = min(max(int(1.5 * vmem_needed), 16 * 1024 * 1024),
                     48 * 1024 * 1024)               # v7x-safe ceiling

    out_padded = pl.pallas_call(
        kernel,
        out_shape=jax.ShapeDtypeStruct((N, f_out_p), out_dtype),
        grid_spec=pltpu.PrefetchScalarGridSpec(
            num_scalar_prefetch=2,                   # cols, counts -> SMEM (1-D)
            grid=(num_i, max_nnz),
            in_specs=[
                sup_spec,
                # adj: only nonzero blocks of block-row i are ever DMA'd.
                pl.BlockSpec((tm, tk),
                             lambda i, k, cols, cnts: (i, cols[i * max_nnz + k])),
            ],
            out_specs=pl.BlockSpec((tm, f_out_p),
                                   lambda i, k, cols, cnts: (i, 0)),
            scratch_shapes=[pltpu.VMEM((tm, f_out_p), jnp.float32)],
        ),
        compiler_params=pltpu.CompilerParams(
            dimension_semantics=("parallel", "arbitrary"),
            vmem_limit_bytes=vmem_limit),
    )(cols_flat, counts, support_c, adj)

    return out_padded[:, :f_out]


if __name__ == "__main__":
    # Small, deterministic example shapes.
    N, in_features, out_features = 512, 64, 64
    tm = tk = 256   # grid (2, max_nnz): exercises megacore axis + block-CSR skip

    key = jax.random.PRNGKey(0)
    kx, kadj, kw, kb = jax.random.split(key, 4)

    # Deterministic nn.Linear-style init: U(-1/sqrt(in), 1/sqrt(in))
    bound = 1.0 / math.sqrt(in_features)
    weight = jax.random.uniform(kw, (out_features, in_features),
                                jnp.float32, -bound, bound)
    bias = jax.random.uniform(kb, (out_features,), jnp.float32, -bound, bound)
    x = jax.random.normal(kx, (N, in_features), jnp.float32)

    # Sparse-ish adjacency, materialized dense (torch.sparse.mm result equals a
    # dense matmul).  Zero out one whole (tm, tk) block so the block-CSR DMA
    # skip is actually exercised.
    adj_dense = jax.random.uniform(kadj, (N, N), jnp.float32)
    adj = jnp.where(adj_dense > 0.9, adj_dense, 0.0)
    adj = adj.at[:tm, tk:].set(0.0)

    # Per-graph metadata: compute once, reuse across layers / time steps.
    block_csr = build_block_csr(adj, tm, tk)

    out = graph_convolution(x, adj, weight, bias, tm=tm, tk=tk,
                            block_csr=block_csr)
    out = jax.block_until_ready(out)
    assert out.shape == (N, out_features)
    assert out.dtype == x.dtype

    # Reference 1: mimics the kernel's bf16-operand / f32-accumulate matmul.
    support_f32 = x @ weight.T + bias
    ref_bf16 = jnp.tanh(jnp.dot(adj.astype(jnp.bfloat16),
                                support_f32.astype(jnp.bfloat16),
                                preferred_element_type=jnp.float32))
    assert jnp.allclose(out, ref_bf16, atol=1e-3, rtol=1e-3), \
        "mismatch vs bf16-accumulate reference"

    # Reference 2: pure-f32 semantics of the PyTorch module (loose tolerance:
    # bf16 operands are a deliberate accuracy/perf tradeoff; callers needing
    # full fidelity pass compute_dtype=jnp.float32).
    ref_f32 = jnp.tanh(adj @ support_f32)
    assert jnp.allclose(out, ref_f32, atol=5e-2, rtol=5e-2), \
        "mismatch vs f32 reference"

    print("KERNEL_OK")
</pallas_src>

<mosaic_0001>
module attributes {stable_mosaic.version = 11 : i64} {
  func.func @kernel(%arg0: i32, %arg1: i32, %arg2: memref<4xi32, #tpu.memory_space<smem>>, %arg3: memref<2xi32, #tpu.memory_space<smem>>, %arg4: memref<512x128xbf16, #tpu.memory_space<vmem>>, %arg5: memref<256x256xf32, #tpu.memory_space<vmem>>, %arg6: memref<256x128xf32, #tpu.memory_space<vmem>>, %arg7: memref<256x128xf32, #tpu.memory_space<vmem>>) attributes {dimension_semantics = [#tpu.dimension_semantics<parallel>, #tpu.dimension_semantics<arbitrary>], iteration_bounds = array<i64: 2, 2>, scalar_prefetch = 2 : i64, scratch_operands = 1 : i64, tpu.core_type = #tpu.core_type<tc>, window_params = [{pipeline_mode = #tpu.pipeline_mode<synchronous>, transform_indices = @transform_0, window_bounds = array<i64: 512, 128>}, {transform_indices = @transform_1, window_bounds = array<i64: 256, 256>}, {transform_indices = @transform_2, window_bounds = array<i64: 256, 128>}]} {
    %c0_i32 = arith.constant 0 : i32
    %0 = arith.cmpi eq, %arg1, %c0_i32 : i32
    %1 = arith.extui %0 : i1 to i32
    %c0_i32_0 = arith.constant 0 : i32
    %2 = arith.cmpi ne, %1, %c0_i32_0 : i32
    scf.if %2 {
      %cst = arith.constant 0.000000e+00 : f32
      %11 = vector.broadcast %cst : f32 to vector<256x128xf32>
      %c0 = arith.constant 0 : index
      %c0_3 = arith.constant 0 : index
      %12 = vector.load %arg7[%c0, %c0_3] : memref<256x128xf32, #tpu.memory_space<vmem>>, vector<256x128xf32>
      tpu.vector_store %arg7[%c0, %c0_3], %11 {strides = array<i32>} : memref<256x128xf32, #tpu.memory_space<vmem>>, vector<256x128xf32>,
    } else {
    }
    %3 = arith.index_cast %arg0 : i32 to index
    %4 = memref.load %arg3[%3] : memref<2xi32, #tpu.memory_space<smem>>
    %5 = arith.cmpi slt, %arg1, %4 : i32
    %6 = arith.extui %5 : i1 to i32
    %c0_i32_1 = arith.constant 0 : i32
    %7 = arith.cmpi ne, %6, %c0_i32_1 : i32
    scf.if %7 {
      %c2_i32 = arith.constant 2 : i32
      %11 = arith.muli %arg0, %c2_i32 : i32
      %12 = arith.addi %11, %arg1 : i32
      %13 = arith.index_cast %12 : i32 to index
      %14 = memref.load %arg2[%13] : memref<4xi32, #tpu.memory_space<smem>>
      %c256_i32 = arith.constant 256 : i32
      %15 = arith.muli %14, %c256_i32 : i32
      %16 = tpu.assume_multiple %15, 256 : i32
      %17 = arith.index_cast %16 : i32 to index
      %c0 = arith.constant 0 : index
      %18 = vector.load %arg4[%17, %c0] : memref<512x128xbf16, #tpu.memory_space<vmem>>, vector<256x128xbf16>
      %c0_3 = arith.constant 0 : index
      %c0_4 = arith.constant 0 : index
      %19 = vector.load %arg7[%c0_3, %c0_4] : memref<256x128xf32, #tpu.memory_space<vmem>>, vector<256x128xf32>
      %c0_5 = arith.constant 0 : index
      %c0_6 = arith.constant 0 : index
      %20 = vector.load %arg5[%c0_5, %c0_6] : memref<256x256xf32, #tpu.memory_space<vmem>>, vector<256x256xf32>
      %21 = arith.truncf %20 : vector<256x256xf32> to vector<256x256xbf16>
      %cst = arith.constant dense<0.000000e+00> : vector<256x128xf32>
      %22 = tpu.matmul %21, %18, %cst {dimension_numbers = #tpu.dot_dimension_numbers<[1], [0], [0], [1], [0, 0, 1, 1], [], []>} : vector<256x256xbf16>, vector<256x128xbf16>, vector<256x128xf32> -> vector<256x128xf32>
      %23 = arith.addf %19, %22 : vector<256x128xf32>
      %c0_7 = arith.constant 0 : index
      %c0_8 = arith.constant 0 : index
      %24 = vector.load %arg7[%c0_7, %c0_8] : memref<256x128xf32, #tpu.memory_space<vmem>>, vector<256x128xf32>
      tpu.vector_store %arg7[%c0_7, %c0_8], %23 {strides = array<i32>} : memref<256x128xf32, #tpu.memory_space<vmem>>, vector<256x128xf32>,
    } else {
    }
    %c1_i32 = arith.constant 1 : i32
    %8 = arith.cmpi eq, %arg1, %c1_i32 : i32
    %9 = arith.extui %8 : i1 to i32
    %c0_i32_2 = arith.constant 0 : i32
    %10 = arith.cmpi ne, %9, %c0_i32_2 : i32
    scf.if %10 {
      %c0 = arith.constant 0 : index
      %c0_3 = arith.constant 0 : index
      %11 = vector.load %arg7[%c0, %c0_3] : memref<256x128xf32, #tpu.memory_space<vmem>>, vector<256x128xf32>
      %12 = math.tanh %11 : vector<256x128xf32>
      %c0_4 = arith.constant 0 : index
      %c0_5 = arith.constant 0 : index
      %13 = vector.load %arg6[%c0_4, %c0_5] : memref<256x128xf32, #tpu.memory_space<vmem>>, vector<256x128xf32>
      tpu.vector_store %arg6[%c0_4, %c0_5], %12 {strides = array<i32>} : memref<256x128xf32, #tpu.memory_space<vmem>>, vector<256x128xf32>,
    } else {
    }
    return
  }
  func.func @transform_0(%arg0: i32, %arg1: i32, %arg2: memref<4xi32, #tpu.memory_space<smem>>, %arg3: memref<2xi32, #tpu.memory_space<smem>>) -> (i32, i32) {
    %c0_i32 = arith.constant 0 : i32
    %c0_i32_0 = arith.constant 0 : i32
    %c0_i32_1 = arith.constant 0 : i32
    return %c0_i32, %c0_i32_0 : i32, i32
  }
  func.func @transform_1(%arg0: i32, %arg1: i32, %arg2: memref<4xi32, #tpu.memory_space<smem>>, %arg3: memref<2xi32, #tpu.memory_space<smem>>) -> (i32, i32) {
    %c2_i32 = arith.constant 2 : i32
    %0 = arith.muli %arg0, %c2_i32 : i32
    %1 = arith.addi %0, %arg1 : i32
    %2 = arith.index_cast %1 : i32 to index
    %3 = memref.load %arg2[%2] : memref<4xi32, #tpu.memory_space<smem>>
    %c0_i32 = arith.constant 0 : i32
    return %arg0, %3 : i32, i32
  }
  func.func @transform_2(%arg0: i32, %arg1: i32, %arg2: memref<4xi32, #tpu.memory_space<smem>>, %arg3: memref<2xi32, #tpu.memory_space<smem>>) -> (i32, i32) {
    %c0_i32 = arith.constant 0 : i32
    %c0_i32_0 = arith.constant 0 : i32
    return %arg0, %c0_i32 : i32, i32
  }
}

</mosaic_0001>

<bundles_post_ra>
// kernel: tpu_custom_call.1
= control target key start
LH: loop header
LB: loop body
LE: loop exit
PB: predicated region body
PF: predicated region fallthrough
CT: control target
= control target key end

     0   :  { %s1523_s21 = smov [#allocation4]   ;;  %s1524_s22 = smov [#allocation5]   ;;  %s1911_s0 = inlined_call_operand.hbm [shape: s32[4], index: 0, kind: input, shape index: {}]   ;;  %s1912_s2 = inlined_call_operand.hbm [shape: bf16[512,128], index: 2, kind: input, shape index: {}]   ;;  %s1913_s3 = inlined_call_operand.hbm [shape: f32[512,512], index: 3, kind: input, shape index: {}]   ;;  %s1914_s4 = inlined_call_operand.hbm [shape: f32[512,128], index: 4, kind: output, shape index: {}]   ;;  %s1915_s1 = inlined_call_operand.hbm [shape: s32[2], index: 1, kind: input, shape index: {}]  }
   0x1   :  { %1922 = sst [smem:[#allocation26_spill]] %s1912_s2  ;;  %s10_s17 = sshll.u32 %s1911_s0, 4  ;;  %s11_s17 = int_to_ptr.hbm [resolvable:$true] %s10_s17 }
   0x2   :  { %s15_s20 = sshll.u32 %s1915_s1, 4  ;;  %s16_s20 = int_to_ptr.hbm [resolvable:$true] %s15_s20 }
   0x3   :  { %13 = dma.hbm_to_smem %s11_s17, 16, %s1523_s21, [#allocation3] }
   0x4   :  { %18 = dma.hbm_to_smem %s16_s20, 16, %s1524_s22, [#allocation3] }
   0x5   :  { %1465 = dma.done.wait [#allocation3], 32 }
   0x6   :  { %1466 = vsyncadd [#allocation3], 4294967264 }
   0x7   :  { %21 = sfence }
   0x8   :  { %22 = vsyncpa [#allocation7], 0 }
   0x9   :  { %23 = vsyncpa [#allocation10], 0 }
   0xa   :  { %25 = vsyncpa [#allocation10 + $0x1], 0 }
   0xb   :  { %26 = vsyncpa [#allocation8], 0 }
   0xc   :  { %28 = vsyncpa [#allocation8 + $0x1], 0  ;;  %s1565_s23 = smov 0   ;;  %s1567_s0 = smov 0  }
   0xd   :  { %s1569_s24 = smov 0   ;;  %s1571_s1 = smov 0  }
   0xe   :  { %s1573_s25 = smov 0   ;;  %s1575_s26 = smov 0  }
   0xf   :  { %s1577_s27 = smov 0   ;;  %s1579_s28 = smov 0  }
  0x10   :  { %s1581_s29 = smov 0   ;;  %s1583_s30 = smov 0  }
  0x11   :  { %s1585_s5 = smov 0  }
  0x12 LB: > { %1923 = sst [smem:[#allocation18_spill]] %s1481_s23  ;;  %s992_s6 = sadd.s32 4294967295, %s1521_s5   ;;  %s1521_s5 = sphi %s1585_s5, %s34_s5   ;;  %s1517_s30 = sphi %s1583_s30, %s1953_s30   ;;  %s1513_s29 = sphi %s1581_s29, %s1945_s29   ;;  %s1509_s28 = sphi %s1579_s28, %s1952_s28   ;;  %s1505_s27 = sphi %s1577_s27, %s1944_s27   ;;  %s1501_s26 = sphi %s1575_s26, %s1951_s26   ;;  %s1497_s25 = sphi %s1573_s25, %s1950_s25   ;;  %s1493_s1 = sphi %s1571_s1, %s1949_s1   ;;  %s1489_s24 = sphi %s1569_s24, %s1942_s24   ;;  %s1485_s0 = sphi %s1567_s0, %s1948_s0   ;;  %s1481_s23 = sphi %s1565_s23, %s1947_s23  }
  0x13   : > { %1924 = sst [smem:[#allocation19_spill]] %s1489_s24  ;;  %s993_s7 = sadd.s32 4294967294, %s1521_s5  }
  0x14   : > { %1925 = sst [smem:[#allocation20_spill]] %s1513_s29  ;;  %p95_p0 = scmp.ne.s32.totalorder %s1497_s25, %s1493_s1 }
  0x15   : > { %p1621_p1 = scmp.eq.s32.totalorder %s992_s6, 0  ;;  %p118_p2 = scmp.ne.s32.totalorder %s1489_s24, %s1485_s0 }
  0x16   : > { %p119_p4 = scmp.eq.s32.totalorder %s992_s6, 3  ;;  %p124_p5 = scmp.ne.s32.totalorder %s1485_s0, %s1481_s23 }
  0x17   : > { %p1629_p3 = por %p1621_p1, %p95_p0  ;;  %p125_p6 = scmp.eq.s32.totalorder %s993_s7, 3 }
  0x18   : > { %p1635_p7 = por %p119_p4, %p118_p2  ;;  %p996_p8 = scmp.ge.s32.totalorder %s1521_s5, 1 }
  0x19   : > { %p1640_p9 = por %p125_p6, %p124_p5  ;;  %p132_p10 = scmp.lt.s32.totalorder %s1521_s5, 5 }
  0x1a   : > { %s1931_s2 = sld [smem:[#allocation26_spill]]  ;;  %s1525_s16 = smov [#allocation6]  }
  0x1b   : > { %s1929_s11 = scalar_select %p1640_p9, 1, 0 }
  0x1c   : > { %p1648_p11 = pnand %p996_p8, %p132_p10  ;;  %s145_s17 = sshll.u32 %s1525_s16, 4  ;;  %s146_s17 = int_to_ptr.vmem [resolvable:$true] %s145_s17 }
  0x1d   : > { %1930 = sst [smem:[#allocation21_spill]] %s1929_s11  ;;  %s1526_s18 = smov 64  }
  0x1e   : > { %p1128_p12 = pneg %p1648_p11  ;;  %s1527_s19 = smov 4  }
  0x1f   : > { %s43_s20 = sadd.s32 1, %s1513_s29  ;;  %s46_s21 = sadd.s32 1, %s1517_s30 }
  0x20   : > { %s143_s14 = sshll.u32 %s1931_s2, 4  ;;  %p1129_p13 = pnand %p1128_p12, %p1621_p1  ;;  %s144_s14 = int_to_ptr.hbm [resolvable:$true] %s143_s14 }
  0x21   : > { %p44_p0 = scmp.ge.s32.totalorder %s43_s20, 2  ;;  %s108_s22 = sadd.s32 1, %s1489_s24 }
  0x22   : > { %1131 = dma.hbm_to_vmem [thread:$0]  (!%p1129_p13), %s144_s14, 4096, %s146_s17, [#allocation7], %s1526_s18, %s1526_s18, %s1527_s19  }
  0x23   : > { %s994_s1 = sshll.u32 %s1517_s30, 1  ;;  %s1955_s21 = smov (!%p44_p0, %s46_s21), %s1517_s30 }
  0x24   : > { %s1957_s20 = smov (%p44_p0, %s43_s20), 0  ;;  %p48_p2 = scmp.ge.s32.totalorder %s1955_s21, 2 }
  0x25   : > { %1933 = sst [smem:[#allocation22_spill]] %s1957_s20  ;;  %s72_s6 = sadd.s32 %s1513_s29, %s994_s1 }
  0x26   : > { %p89_p4 = scmp.ne.s32.totalorder %s1501_s26, %s1497_s25  ;;  %p90_p5 = scmp.eq.s32.totalorder %s1521_s5, 0 }
  0x27   : > { %s1959_s21 = smov (%p48_p2, %s1955_s21), 0  ;;  %s73_s7 = sld [smem:[#allocation4 + %s72_s6]] }
  0x28   : > { %1934 = sst [smem:[#allocation23_spill]] %s1959_s21  ;;  %p1143_p6 = scmp.lt.s32.totalorder %s1521_s5, 4 }
  0x29   : > { %s995_s12 = sshll.u32 %s1959_s21, 1  ;;  %s77_s13 = ssub.s32 %s1517_s30, %s1959_s21 }
  0x2a   : > { %s75_s14 = sadd.s32 %s995_s12, %s1957_s20  ;;  %p106_p8 = scmp.eq.s32.totalorder %s77_s13, 0 }
  0x2b   : > { %s76_s16 = sld [smem:[#allocation4 + %s75_s14]]  ;;  %p1674_p10 = por %p90_p5, %p89_p4 }
  0x2c   : > { %s1679_s18 = scalar_select %p106_p8, %s1489_s24, %s108_s22  }
  0x2d   : > { %s159_s19 = sand.u32 1, %s1501_s26   ;;  %p1686_p12 = pnand %p1143_p6, %p1674_p10 }
  0x2e   : > { %1936 = sst [smem:[#allocation24_spill]] %s1679_s18  ;;  %s1961_s6 = smov (!%p1674_p10, %s72_s6), 0 }
  0x2f   : > { %s1120_s12 = scalar_select %p1674_p10, [#allocation4], [#allocation12] }
  0x30   : > { %s82_s2 = sadd.s32 1, %s1501_s26  ;;  %s999_s20 = sshll.u32 %s159_s19, 9 }
  0x31   : > { %s78_s14 = ssub.s32 %s73_s7, %s76_s16  ;;  %s1963_s12 = smov (!%p1143_p6, %s1120_s12), [#allocation13] }
  0x32   : > { %s79_s21 = sor.u32 %s78_s14, %s77_s13  ;;  %s1965_s6 = smov (!%p1143_p6, %s1961_s6), 0 }
  0x33   : > { %p80_p13 = scmp.eq.s32.totalorder %s79_s21, 0  ;;  %s166_s29 = sld [smem:[%s1963_s12 + %s1965_s6]] }
  0x34   : > { %s163_s18 = scalar_lea.vmem [#allocation9], %s999_s20  ;;  %s1084_s11 = sshll.u32 %s1517_s30, 7 }
  0x35   : > { %s1698_s22 = scalar_select %p80_p13, %s1501_s26, %s82_s2  }
  0x36   : > { %s1702_s24 = sshll.u32 %s163_s18, 4  ;;  %s160_s2 = scalar_lea.sflag [#allocation10], %s159_s19  ;;  %s178_s24 = int_to_ptr.vmem [resolvable:$true] %s1702_s24 }
  0x37   : > { %1938 = sst [smem:[#allocation25_spill]] %s1698_s22  ;;  %p1367_p2 = pneg %p1686_p12 }
  0x39   : > { %s1002_s17 = sshll.u32 %s166_s29, 1 }
  0x3a   : > { %s172_s7 = sadd.s32 %s1084_s11, %s1002_s17  ;;  %s1370_s11 = scalar_lea.hbm %s1913_s3, 2048 }
  0x3b   : > { %s1004_s16 = sshll.u32 %s172_s7, 3 }
  0x3c   : > { %s174_s21 = scalar_lea.hbm %s1913_s3, %s1004_s16 }
  0x3d   : > { %s175_s23 = sshll.u32 %s174_s21, 4  ;;  %s176_s23 = int_to_ptr.hbm [resolvable:$true] %s175_s23 }
  0x3e   : > { %s1363_s22 = sshra.s32 %s176_s23, 4  ;;  %s1364_s22 = int_to_ptr.hbm [resolvable:$true] %s1363_s22 }
  0x3f   : > { %s1365_s6 = scalar_lea.hbm %s1364_s22, 512  ;;  %p1371_p6 = scmp.lt.s32.totalorder %s1364_s22, %s1913_s3 }
  0x40   : > { %p1366_p0 = scmp.ne.s32.totalorder %s1364_s22, %s1365_s6  ;;  %p1372_p8 = scmp.lt.s32.totalorder %s1370_s11, %s1365_s6 }
  0x42   : > { %p1368_p4 = pnand %p1367_p2, %p1366_p0  ;;  %p1373_p10 = por %p1372_p8, %p1371_p6 }
  0x44   : > { %p1369_p5 = pneg %p1368_p4 }
  0x46   : > { %p1374_p13 = pnand %p1373_p10, %p1369_p5 }
  0x48   : > { %1377 = shalt.err (!%p1374_p13)
}
  0x49   : > { %s1528_s19 = smov 512   ;;  %s1529_s17 = smov 256  }
  0x4a   : > { %s1530_s7 = smov 16   ;;  %189 = sbr.rel (%p1648_p11) target bundleno = 496 (0x1f0), region = 28 }
  0x4b   : > { %1137 = dma.hbm_to_vmem [thread:$0]  (!%p1686_p12), %s176_s23, 8192, %s178_s24, %s160_s2, %s1528_s19, %s1529_s17, %s1530_s7  }
  0x4f   : > { %1468 = dma.done.wait (%p1621_p1), [#allocation7], 4096  }
  0x50   : > { %1470 = vsyncadd (%p1621_p1), [#allocation7], 4294963200  ;;  %s196_s22 = sand.u32 1, %s1497_s25  }
  0x51   : > { %s1007_s16 = sshll.u32 %s196_s22, 9  ;;  %s197_s13 = scalar_lea.sflag [#allocation10], %s196_s22 }
  0x52   : > { %s1726_s14 = scalar_lea.vmem [#allocation9], %s1007_s16 }
  0x53   : > { %1472 = dma.done.wait (%p1629_p3), %s197_s13, 8192  }
  0x54   : > { %1474 = vsyncadd (%p1629_p3), %s197_s13, 4294959104  ;;  %s219_s23 = sand.u32 1, %s1485_s0   ;;  %p1009_p1 = scmp.ne.s32.totalorder %s1505_s27, 0 }
  0x55   : > { %s1008_s24 = sshll.u32 %s219_s23, 8 }
  0x56   : > { %s1735_s15 = scalar_lea.vmem [#allocation11], %s1008_s24  ;;  %231 = sbr.rel (%p1009_p1) target bundleno = 124 (0x7c), region = 40 }
  0x5b   : > { %v1531_v0 = vmov 0.0  }
  0x5c   : > { %232 = vst [vmem:[#allocation2 + $0xb0] sm:$0xff] %v1531_v0 }
  0x5d   : > { %233 = vst [vmem:[#allocation2] sm:$0xff] %v1531_v0 }
  0x5e   : > { %234 = vst [vmem:[#allocation2 + $0xd8] sm:$0xff] %v1531_v0 }
  0x5f   : > { %235 = vst [vmem:[#allocation2 + $0x18] sm:$0xff] %v1531_v0 }
  0x60   : > { %236 = vst [vmem:[#allocation2 + $0x50] sm:$0xff] %v1531_v0 }
  0x61   : > { %237 = vst [vmem:[#allocation2 + $0x68] sm:$0xff] %v1531_v0 }
  0x62   : > { %238 = vst [vmem:[#allocation2 + $0x30] sm:$0xff] %v1531_v0 }
  0x63   : > { %239 = vst [vmem:[#allocation2 + $0x48] sm:$0xff] %v1531_v0 }
  0x64   : > { %240 = vst [vmem:[#allocation2 + $0x80] sm:$0xff] %v1531_v0 }
  0x65   : > { %241 = vst [vmem:[#allocation2 + $0x88] sm:$0xff] %v1531_v0 }
  0x66   : > { %242 = vst [vmem:[#allocation2 + $0xe8] sm:$0xff] %v1531_v0 }
  0x67   : > { %243 = vst [vmem:[#allocation2 + $0xb8] sm:$0xff] %v1531_v0 }
  0x68   : > { %244 = vst [vmem:[#allocation2 + $0x60] sm:$0xff] %v1531_v0 }
  0x69   : > { %245 = vst [vmem:[#allocation2 + $0xf0] sm:$0xff] %v1531_v0 }
  0x6a   : > { %246 = vst [vmem:[#allocation2 + $0x8] sm:$0xff] %v1531_v0 }
  0x6b   : > { %247 = vst [vmem:[#allocation2 + $0x78] sm:$0xff] %v1531_v0 }
  0x6c   : > { %248 = vst [vmem:[#allocation2 + $0x38] sm:$0xff] %v1531_v0 }
  0x6d   : > { %249 = vst [vmem:[#allocation2 + $0x58] sm:$0xff] %v1531_v0 }
  0x6e   : > { %250 = vst [vmem:[#allocation2 + $0x40] sm:$0xff] %v1531_v0 }
  0x6f   : > { %251 = vst [vmem:[#allocation2 + $0xc8] sm:$0xff] %v1531_v0 }
  0x70   : > { %252 = vst [vmem:[#allocation2 + $0xe0] sm:$0xff] %v1531_v0 }
  0x71   : > { %253 = vst [vmem:[#allocation2 + $0x90] sm:$0xff] %v1531_v0 }
  0x72   : > { %254 = vst [vmem:[#allocation2 + $0x70] sm:$0xff] %v1531_v0 }
  0x73   : > { %255 = vst [vmem:[#allocation2 + $0xc0] sm:$0xff] %v1531_v0 }
  0x74   : > { %256 = vst [vmem:[#allocation2 + $0xa8] sm:$0xff] %v1531_v0 }
  0x75   : > { %257 = vst [vmem:[#allocation2 + $0xd0] sm:$0xff] %v1531_v0 }
  0x76   : > { %258 = vst [vmem:[#allocation2 + $0x10] sm:$0xff] %v1531_v0 }
  0x77   : > { %259 = vst [vmem:[#allocation2 + $0x28] sm:$0xff] %v1531_v0 }
  0x78   : > { %260 = vst [vmem:[#allocation2 + $0xa0] sm:$0xff] %v1531_v0 }
  0x79   : > { %261 = vst [vmem:[#allocation2 + $0xf8] sm:$0xff] %v1531_v0 }
  0x7a   : > { %262 = vst [vmem:[#allocation2 + $0x20] sm:$0xff] %v1531_v0 }
  0x7b   : > { %263 = vst [vmem:[#allocation2 + $0x98] sm:$0xff] %v1531_v0 }
  0x7c PF: > { %s264_s8 = sld [smem:[#allocation5 + %s1509_s28]] }
  0x82   : > { %p1010_p3 = scmp.ge.s32.totalorder %s1505_s27, %s264_s8 }
  0x83   : > { %s1011_s9 = sshll.u32 (!%p1010_p3), %s1509_s28, 1 }
  0x84   : > { %268 = sbr.rel (%p1010_p3) target bundleno = 433 (0x1b1), region = 44  ;;  %s270_s1 = sadd.s32 (!%p1010_p3), %s1505_s27, %s1011_s9 }
  0x85   : > { %s271_s21 = sld [smem:[#allocation4 + %s270_s1]] (!%p1010_p3) }
  0x89   : > { %v341_v15 = vld [vmem:[%s1726_s14] sm:$0xff]  ;;  %v343_v17 = vld [vmem:[%s1726_s14 + $0x10] sm:$0xff]  ;;  %v342_v21 = vld [vmem:[%s1726_s14 + $0x8] sm:$0xff] }
  0x8a   : > { %v373_v18 = vld [vmem:[%s1726_s14 + $0x100] sm:$0xff]  ;;  %v375_v20 = vld [vmem:[%s1726_s14 + $0x110] sm:$0xff]  ;;  %v344_v22 = vld [vmem:[%s1726_s14 + $0x18] sm:$0xff]  ;;  %v405_v25 = vpack.c.bf16 %v343_v17, %v341_v15 }
  0x8b   : > { %s1012_s2 = sshll.u32 %s271_s21, 8  ;;  %v374_v23 = vld [vmem:[%s1726_s14 + $0x108] sm:$0xff]  ;;  %v376_v24 = vld [vmem:[%s1726_s14 + $0x118] sm:$0xff]  ;;  %v421_v26 = vpack.c.bf16 %v375_v20, %v373_v18  ;;  %v406_v27 = vpack.c.bf16 %v344_v22, %v342_v21  ;;  %v345_v29 = vld [vmem:[%s1726_s14 + $0x20] sm:$0xff] }
  0x8c   : > { %s273_s6 = sshra.s32 %s1012_s2, 3  ;;  %v422_v28 = vpack.c.bf16 %v376_v24, %v374_v23  ;;  %v347_v30 = vld [vmem:[%s1726_s14 + $0x30] sm:$0xff]  ;;  %v377_v31 = vld [vmem:[%s1726_s14 + $0x120] sm:$0xff]  ;;  %v346_v33 = vld [vmem:[%s1726_s14 + $0x28] sm:$0xff] }
  0x8d   : > { %s1013_s20 = sshll.u32 %s273_s6, 2  ;;  %v379_v32 = vld [vmem:[%s1726_s14 + $0x130] sm:$0xff]  ;;  %v348_v34 = vld [vmem:[%s1726_s14 + $0x38] sm:$0xff]  ;;  %v378_v35 = vld [vmem:[%s1726_s14 + $0x128] sm:$0xff]  ;;  %v407_v37 = vpack.c.bf16 %v347_v30, %v345_v29 }
  0x8e   : > { %s1742_s29 = scalar_lea.vmem [#allocation6], %s1013_s20  ;;  %v380_v36 = vld [vmem:[%s1726_s14 + $0x138] sm:$0xff]  ;;  %v423_v38 = vpack.c.bf16 %v379_v32, %v377_v31  ;;  %v408_v39 = vpack.c.bf16 %v348_v34, %v346_v33  ;;  %v349_v41 = vld [vmem:[%s1726_s14 + $0x40] sm:$0xff]  ;;  %v351_v42 = vld [vmem:[%s1726_s14 + $0x50] sm:$0xff] }
  0x8f   : > { %v1092_v1 = vld [vmem:[%s1742_s29 + $0x38] sm:$0xff]  ;;  %v1091_v3 = vld [vmem:[%s1742_s29 + $0x30] sm:$0xff]  ;;  %v1090_v5 = vld [vmem:[%s1742_s29 + $0x28] sm:$0xff]  ;;  %v424_v40 = vpack.c.bf16 %v380_v36, %v378_v35  ;;  %v409_v49 = vpack.c.bf16 %v351_v42, %v349_v41 }
  0x90   : > { %v1100_v2 = vld [vmem:[%s1742_s29 + $0x78] sm:$0xff]  ;;  %533 = vmatpush.bf16.msra.mxu0 %v1092_v1  ;;  %1102 = vmatpush.bf16.msra.mxu2 %v1092_v1  ;;  %v1099_v4 = vld [vmem:[%s1742_s29 + $0x70] sm:$0xff]  ;;  %v1098_v6 = vld [vmem:[%s1742_s29 + $0x68] sm:$0xff] }
  0x91   : > { %622 = vmatpush.bf16.msra.mxu1 %v1100_v2  ;;  %1110 = vmatpush.bf16.msra.mxu3 %v1100_v2  ;;  %v1089_v7 = vld [vmem:[%s1742_s29 + $0x20] sm:$0xff]  ;;  %v1088_v9 = vld [vmem:[%s1742_s29 + $0x18] sm:$0xff]  ;;  %v1087_v11 = vld [vmem:[%s1742_s29 + $0x10] sm:$0xff] }
  0x92   : > { %v1097_v8 = vld [vmem:[%s1742_s29 + $0x60] sm:$0xff]  ;;  %v1096_v10 = vld [vmem:[%s1742_s29 + $0x58] sm:$0xff]  ;;  %v1095_v12 = vld [vmem:[%s1742_s29 + $0x50] sm:$0xff] }
  0x93   : > { %v1086_v13 = vld [vmem:[%s1742_s29 + $0x8] sm:$0xff]  ;;  %v1085_v16 = vld [vmem:[%s1742_s29] sm:$0xff]  ;;  %v383_v44 = vld [vmem:[%s1726_s14 + $0x150] sm:$0xff] }
  0x94   : > { %534 = vmatpush.bf16.msra.mxu0 %v1091_v3  ;;  %1103 = vmatpush.bf16.msra.mxu2 %v1091_v3  ;;  %v1094_v14 = vld [vmem:[%s1742_s29 + $0x48] sm:$0xff]  ;;  %v1093_v19 = vld [vmem:[%s1742_s29 + $0x40] sm:$0xff]  ;;  %v352_v46 = vld [vmem:[%s1726_s14 + $0x58] sm:$0xff] }
  0x95   : > { %623 = vmatpush.bf16.msra.mxu1 %v1099_v4  ;;  %1111 = vmatpush.bf16.msra.mxu3 %v1099_v4  ;;  %v381_v43 = vld [vmem:[%s1726_s14 + $0x140] sm:$0xff]  ;;  %v350_v45 = vld [vmem:[%s1726_s14 + $0x48] sm:$0xff]  ;;  %v384_v48 = vld [vmem:[%s1726_s14 + $0x158] sm:$0xff] }
  0x96   : > { %v382_v47 = vld [vmem:[%s1726_s14 + $0x148] sm:$0xff]  ;;  %v425_v50 = vpack.c.bf16 %v383_v44, %v381_v43  ;;  %v410_v51 = vpack.c.bf16 %v352_v46, %v350_v45  ;;  %v353_v53 = vld [vmem:[%s1726_s14 + $0x60] sm:$0xff]  ;;  %v355_v54 = vld [vmem:[%s1726_s14 + $0x70] sm:$0xff] }
  0x97   : > { %v426_v52 = vpack.c.bf16 %v384_v48, %v382_v47  ;;  %v385_v55 = vld [vmem:[%s1726_s14 + $0x160] sm:$0xff]  ;;  %v387_v56 = vld [vmem:[%s1726_s14 + $0x170] sm:$0xff]  ;;  %v354_v57 = vld [vmem:[%s1726_s14 + $0x68] sm:$0xff]  ;;  %v411_v61 = vpack.c.bf16 %v355_v54, %v353_v53 }
  0x98   : > { %535 = vmatpush.bf16.msra.mxu0 %v1090_v5  ;;  %1104 = vmatpush.bf16.msra.mxu2 %v1090_v5  ;;  %v356_v58 = vld [vmem:[%s1726_s14 + $0x78] sm:$0xff]  ;;  %v386_v59 = vld [vmem:[%s1726_s14 + $0x168] sm:$0xff]  ;;  %v427_v62 = vpack.c.bf16 %v387_v56, %v385_v55  ;;  %v357_v1 = vld [vmem:[%s1726_s14 + $0x80] sm:$0xff] }
  0x99   : > { %624 = vmatpush.bf16.msra.mxu1 %v1098_v6  ;;  %1112 = vmatpush.bf16.msra.mxu3 %v1098_v6  ;;  %v388_v60 = vld [vmem:[%s1726_s14 + $0x178] sm:$0xff]  ;;  %v412_v63 = vpack.c.bf16 %v356_v58, %v354_v57  ;;  %v359_v2 = vld [vmem:[%s1726_s14 + $0x90] sm:$0xff]  ;;  %v389_v3 = vld [vmem:[%s1726_s14 + $0x180] sm:$0xff] }
  0x9a   : > { %v428_v0 = vpack.c.bf16 %v388_v60, %v386_v59  ;;  %v391_v4 = vld [vmem:[%s1726_s14 + $0x190] sm:$0xff]  ;;  %v358_v5 = vld [vmem:[%s1726_s14 + $0x88] sm:$0xff]  ;;  %v360_v6 = vld [vmem:[%s1726_s14 + $0x98] sm:$0xff] }
  0x9b   : > { %v393_v15 = vld [vmem:[%s1726_s14 + $0x1a0] sm:$0xff]  ;;  %v362_v17 = vld [vmem:[%s1726_s14 + $0xa8] sm:$0xff]  ;;  %v364_v18 = vld [vmem:[%s1726_s14 + $0xb8] sm:$0xff] }
  0x9c   : > { %536 = vmatpush.bf16.msra.mxu0 %v1089_v7  ;;  %1105 = vmatpush.bf16.msra.mxu2 %v1089_v7  ;;  %v390_v7 = vld [vmem:[%s1726_s14 + $0x188] sm:$0xff]  ;;  %v396_v20 = vld [vmem:[%s1726_s14 + $0x1b8] sm:$0xff]  ;;  %v416_v23 = vpack.c.bf16 %v364_v18, %v362_v17  ;;  %v310_v59 = vld [vmem:[#allocation2] sm:$0xff] }
  0x9d   : > { %625 = vmatpush.bf16.msra.mxu1 %v1097_v8  ;;  %1113 = vmatpush.bf16.msra.mxu3 %v1097_v8  ;;  %v392_v8 = vld [vmem:[%s1726_s14 + $0x198] sm:$0xff]  ;;  %v366_v29 = vld [vmem:[%s1726_s14 + $0xc8] sm:$0xff] }
  0x9e   : > { %v368_v30 = vld [vmem:[%s1726_s14 + $0xd8] sm:$0xff]  ;;  %v398_v31 = vld [vmem:[%s1726_s14 + $0x1c8] sm:$0xff] }
  0x9f   : > { %v400_v32 = vld [vmem:[%s1726_s14 + $0x1d8] sm:$0xff]  ;;  %v418_v35 = vpack.c.bf16 %v368_v30, %v366_v29  ;;  %v370_v41 = vld [vmem:[%s1726_s14 + $0xe8] sm:$0xff] }
  0xa0   : > { %537 = vmatpush.bf16.msra.mxu0 %v1088_v9  ;;  %1106 = vmatpush.bf16.msra.mxu2 %v1088_v9  ;;  %v413_v9 = vpack.c.bf16 %v359_v2, %v357_v1  ;;  %v434_v36 = vpack.c.bf16 %v400_v32, %v398_v31  ;;  %v372_v42 = vld [vmem:[%s1726_s14 + $0xf8] sm:$0xff]  ;;  %v402_v43 = vld [vmem:[%s1726_s14 + $0x1e8] sm:$0xff]  ;;  %v329_v31 = vld [vmem:[#allocation2 + $0xe0] sm:$0xff] }
  0xa1   : > { %626 = vmatpush.bf16.msra.mxu1 %v1096_v10  ;;  %1114 = vmatpush.bf16.msra.mxu3 %v1096_v10  ;;  %v429_v10 = vpack.c.bf16 %v391_v4, %v389_v3  ;;  %v404_v44 = vld [vmem:[%s1726_s14 + $0x1f8] sm:$0xff]  ;;  %v420_v47 = vpack.c.bf16 %v372_v42, %v370_v41  ;;  %v330_v41 = vld [vmem:[#allocation2 + $0x90] sm:$0xff] }
  0xa2   : > { %v436_v48 = vpack.c.bf16 %v404_v44, %v402_v43  ;;  %v325_v55 = vld [vmem:[#allocation2 + $0x38] sm:$0xff] }
  0xa3   : > { %v326_v1 = vld [vmem:[#allocation2 + $0x58] sm:$0xff] }
  0xa4   : > { %538 = vmatpush.bf16.msra.mxu0 %v1087_v11  ;;  %1107 = vmatpush.bf16.msra.mxu2 %v1087_v11  ;;  %v414_v11 = vpack.c.bf16 %v360_v6, %v358_v5  ;;  %v311_v5 = vld [vmem:[#allocation2 + $0xd8] sm:$0xff] }
  0xa5   : > { %627 = vmatpush.bf16.msra.mxu1 %v1095_v12  ;;  %1115 = vmatpush.bf16.msra.mxu3 %v1095_v12  ;;  %v430_v12 = vpack.c.bf16 %v392_v8, %v390_v7 }
  0xa8   : > { %539 = vmatpush.bf16.msra.mxu0 %v1086_v13  ;;  %1108 = vmatpush.bf16.msra.mxu2 %v1086_v13  ;;  %v361_v13 = vld [vmem:[%s1726_s14 + $0xa0] sm:$0xff] }
  0xa9   : > { %628 = vmatpush.bf16.msra.mxu1 %v1094_v14  ;;  %1116 = vmatpush.bf16.msra.mxu3 %v1094_v14  ;;  %v363_v14 = vld [vmem:[%s1726_s14 + $0xb0] sm:$0xff] }
  0xaa   : > { %v415_v21 = vpack.c.bf16 %v363_v14, %v361_v13 }
  0xac   : > { %540 = vmatpush.bf16.msra.mxu0 %v1085_v16  ;;  %1109 = vmatpush.bf16.msra.mxu2 %v1085_v16  ;;  %v395_v16 = vld [vmem:[%s1726_s14 + $0x1b0] sm:$0xff] }
  0xad   : > { %629 = vmatpush.bf16.msra.mxu1 %v1093_v19  ;;  %1117 = vmatpush.bf16.msra.mxu3 %v1093_v19  ;;  %v394_v19 = vld [vmem:[%s1726_s14 + $0x1a8] sm:$0xff]  ;;  %v431_v22 = vpack.c.bf16 %v395_v16, %v393_v15  ;;  %v312_v15 = vld [vmem:[#allocation2 + $0x18] sm:$0xff] }
  0xae   : > { %v432_v24 = vpack.c.bf16 %v396_v20, %v394_v19 }
  0xaf   : > { %541 = vmatmul.bf16.vlgmr.msra.gmra.mxu0 %v405_v25  ;;  %581 = vmatmul.bf16.vlgmr.msra.gmra.mxu2 %v421_v26  ;;  %v365_v25 = vld [vmem:[%s1726_s14 + $0xc0] sm:$0xff]  ;;  %v367_v26 = vld [vmem:[%s1726_s14 + $0xd0] sm:$0xff] }
  0xb0   : > { %630 = vmatmul.bf16.vlgmr.msra.gmra.mxu1 %v406_v27  ;;  %670 = vmatmul.bf16.vlgmr.msra.gmra.mxu3 %v422_v28  ;;  %v397_v27 = vld [vmem:[%s1726_s14 + $0x1c0] sm:$0xff]  ;;  %v399_v28 = vld [vmem:[%s1726_s14 + $0x1d0] sm:$0xff]  ;;  %v417_v33 = vpack.c.bf16 %v367_v26, %v365_v25 }
  0xb1   : > { %v433_v34 = vpack.c.bf16 %v399_v28, %v397_v27  ;;  %v313_v25 = vld [vmem:[#allocation2 + $0x50] sm:$0xff] }
  0xbf   : > { %546 = vmatmul.bf16.gmra.mxu0 %v407_v37  ;;  %586 = vmatmul.bf16.gmra.mxu2 %v423_v38  ;;  %v369_v37 = vld [vmem:[%s1726_s14 + $0xe0] sm:$0xff]  ;;  %v371_v38 = vld [vmem:[%s1726_s14 + $0xf0] sm:$0xff] }
  0xc0   : > { %635 = vmatmul.bf16.gmra.mxu1 %v408_v39  ;;  %675 = vmatmul.bf16.gmra.mxu3 %v424_v40  ;;  %v401_v39 = vld [vmem:[%s1726_s14 + $0x1e0] sm:$0xff]  ;;  %v403_v40 = vld [vmem:[%s1726_s14 + $0x1f0] sm:$0xff]  ;;  %v419_v45 = vpack.c.bf16 %v371_v38, %v369_v37 }
  0xc1   : > { %v435_v46 = vpack.c.bf16 %v403_v40, %v401_v39 }
  0xcf   : > { %551 = vmatmul.bf16.gmra.mxu0 %v409_v49  ;;  %591 = vmatmul.bf16.gmra.mxu2 %v425_v50  ;;  %v309_v50 = vld [vmem:[#allocation2 + $0xb0] sm:$0xff] }
  0xd0   : > { %640 = vmatmul.bf16.gmra.mxu1 %v410_v51  ;;  %680 = vmatmul.bf16.gmra.mxu3 %v426_v52 }
  0xdf   : > { %556 = vmatmul.bf16.gmra.mxu0 %v411_v61  ;;  %596 = vmatmul.bf16.gmra.mxu2 %v427_v62 }
  0xe0   : > { %645 = vmatmul.bf16.gmra.mxu1 %v412_v63  ;;  %685 = vmatmul.bf16.gmra.mxu3 %v428_v0 }
  0xef   : > { %561 = vmatmul.bf16.gmra.mxu0 %v413_v9  ;;  %601 = vmatmul.bf16.gmra.mxu2 %v429_v10 }
  0xf0   : > { %650 = vmatmul.bf16.gmra.mxu1 %v414_v11  ;;  %690 = vmatmul.bf16.gmra.mxu3 %v430_v12  ;;  %v327_v11 = vld [vmem:[#allocation2 + $0x40] sm:$0xff] }
  0xff   : > { %566 = vmatmul.bf16.gmra.mxu0 %v415_v21  ;;  %606 = vmatmul.bf16.gmra.mxu2 %v431_v22  ;;  %v328_v21 = vld [vmem:[#allocation2 + $0xc8] sm:$0xff] }
 0x100   : > { %655 = vmatmul.bf16.gmra.mxu1 %v416_v23  ;;  %695 = vmatmul.bf16.gmra.mxu3 %v432_v24 }
 0x10f   : > { %571 = vmatmul.bf16.gmra.mxu0 %v417_v33  ;;  %611 = vmatmul.bf16.gmra.mxu2 %v433_v34 }
 0x110   : > { %660 = vmatmul.bf16.gmra.mxu1 %v418_v35  ;;  %700 = vmatmul.bf16.gmra.mxu3 %v434_v36  ;;  %v314_v35 = vld [vmem:[#allocation2 + $0x68] sm:$0xff] }
 0x11f   : > { %576 = vmatmul.bf16.gmra.mxu0 %v419_v45  ;;  %616 = vmatmul.bf16.gmra.mxu2 %v435_v46  ;;  %v315_v45 = vld [vmem:[#allocation2 + $0x30] sm:$0xff] }
 0x120   : > { %665 = vmatmul.bf16.gmra.mxu1 %v420_v47  ;;  %705 = vmatmul.bf16.gmra.mxu3 %v436_v48 }
 0x12c   : > { %v542_v49 = vpop.f32.mrf.mxu0 }
 0x12d   : > { %v631_v51 = vpop.f32.mrf.mxu1 }
 0x12e   : > { %v632_v52 = vadd.f32 %v631_v51, %v542_v49  ;;  %v331_v51 = vld [vmem:[#allocation2 + $0x70] sm:$0xff] }
 0x130   : > { %v711_v53 = vadd.f32 %v632_v52, %v309_v50 }
 0x132   : > { %743 = vst [vmem:[#allocation2 + $0xb0] sm:$0xff] %v711_v53  ;;  %v582_v54 = vpop.f32.mrf.mxu2 }
 0x133   : > { %v671_v56 = vpop.f32.mrf.mxu3 }
 0x134   : > { %v672_v57 = vadd.f32 %v671_v56, %v582_v54  ;;  %v544_v58 = vpop.f32.mrf.mxu0 }
 0x135   : > { %v633_v60 = vpop.f32.mrf.mxu1 }
 0x136   : > { %v727_v61 = vadd.f32 %v672_v57, %v325_v55  ;;  %v634_v62 = vadd.f32 %v633_v60, %v544_v58  ;;  %v316_v55 = vld [vmem:[#allocation2 + $0x48] sm:$0xff] }
 0x138   : > { %759 = vst [vmem:[#allocation2 + $0x38] sm:$0xff] %v727_v61  ;;  %v712_v63 = vadd.f32 %v634_v62, %v310_v59  ;;  %v332_v61 = vld [vmem:[#allocation2 + $0xc0] sm:$0xff] }
 0x13a   : > { %744 = vst [vmem:[#allocation2] sm:$0xff] %v712_v63  ;;  %v584_v0 = vpop.f32.mrf.mxu2 }
 0x13b   : > { %v673_v2 = vpop.f32.mrf.mxu3 }
 0x13c   : > { %v674_v3 = vadd.f32 %v673_v2, %v584_v0  ;;  %v547_v4 = vpop.f32.mrf.mxu0 }
 0x13d   : > { %v636_v6 = vpop.f32.mrf.mxu1 }
 0x13e   : > { %v728_v7 = vadd.f32 %v674_v3, %v326_v1  ;;  %v637_v8 = vadd.f32 %v636_v6, %v547_v4  ;;  %v317_v1 = vld [vmem:[#allocation2 + $0x80] sm:$0xff] }
 0x140   : > { %760 = vst [vmem:[#allocation2 + $0x58] sm:$0xff] %v728_v7  ;;  %v713_v9 = vadd.f32 %v637_v8, %v311_v5  ;;  %v333_v7 = vld [vmem:[#allocation2 + $0xa8] sm:$0xff] }
 0x142   : > { %745 = vst [vmem:[#allocation2 + $0xd8] sm:$0xff] %v713_v9  ;;  %v587_v10 = vpop.f32.mrf.mxu2 }
 0x143   : > { %v676_v12 = vpop.f32.mrf.mxu3 }
 0x144   : > { %v677_v13 = vadd.f32 %v676_v12, %v587_v10  ;;  %v549_v14 = vpop.f32.mrf.mxu0 }
 0x145   : > { %v638_v16 = vpop.f32.mrf.mxu1 }
 0x146   : > { %v729_v17 = vadd.f32 %v677_v13, %v327_v11  ;;  %v639_v18 = vadd.f32 %v638_v16, %v549_v14  ;;  %v318_v11 = vld [vmem:[#allocation2 + $0x88] sm:$0xff] }
 0x148   : > { %761 = vst [vmem:[#allocation2 + $0x40] sm:$0xff] %v729_v17  ;;  %v714_v19 = vadd.f32 %v639_v18, %v312_v15  ;;  %v334_v17 = vld [vmem:[#allocation2 + $0xd0] sm:$0xff] }
 0x14a   : > { %746 = vst [vmem:[#allocation2 + $0x18] sm:$0xff] %v714_v19  ;;  %v589_v20 = vpop.f32.mrf.mxu2 }
 0x14b   : > { %v678_v22 = vpop.f32.mrf.mxu3 }
 0x14c   : > { %v679_v23 = vadd.f32 %v678_v22, %v589_v20  ;;  %v552_v24 = vpop.f32.mrf.mxu0 }
 0x14d   : > { %v641_v26 = vpop.f32.mrf.mxu1 }
 0x14e   : > { %v730_v27 = vadd.f32 %v679_v23, %v328_v21  ;;  %v642_v28 = vadd.f32 %v641_v26, %v552_v24  ;;  %v319_v21 = vld [vmem:[#allocation2 + $0xe8] sm:$0xff] }
 0x150   : > { %762 = vst [vmem:[#allocation2 + $0xc8] sm:$0xff] %v730_v27  ;;  %v715_v29 = vadd.f32 %v642_v28, %v313_v25  ;;  %v335_v27 = vld [vmem:[#allocation2 + $0x10] sm:$0xff] }
 0x152   : > { %747 = vst [vmem:[#allocation2 + $0x50] sm:$0xff] %v715_v29  ;;  %v592_v30 = vpop.f32.mrf.mxu2 }
 0x153   : > { %v681_v32 = vpop.f32.mrf.mxu3 }
 0x154   : > { %v682_v33 = vadd.f32 %v681_v32, %v592_v30  ;;  %v554_v34 = vpop.f32.mrf.mxu0 }
 0x155   : > { %v643_v36 = vpop.f32.mrf.mxu1 }
 0x156   : > { %v731_v37 = vadd.f32 %v682_v33, %v329_v31  ;;  %v644_v38 = vadd.f32 %v643_v36, %v554_v34  ;;  %v320_v31 = vld [vmem:[#allocation2 + $0xb8] sm:$0xff] }
 0x158   : > { %763 = vst [vmem:[#allocation2 + $0xe0] sm:$0xff] %v731_v37  ;;  %v716_v39 = vadd.f32 %v644_v38, %v314_v35  ;;  %v336_v37 = vld [vmem:[#allocation2 + $0x28] sm:$0xff] }
 0x15a   : > { %748 = vst [vmem:[#allocation2 + $0x68] sm:$0xff] %v716_v39  ;;  %v594_v40 = vpop.f32.mrf.mxu2 }
 0x15b   : > { %v683_v42 = vpop.f32.mrf.mxu3 }
 0x15c   : > { %v684_v43 = vadd.f32 %v683_v42, %v594_v40  ;;  %v557_v44 = vpop.f32.mrf.mxu0 }
 0x15d   : > { %v646_v46 = vpop.f32.mrf.mxu1 }
 0x15e   : > { %v732_v47 = vadd.f32 %v684_v43, %v330_v41  ;;  %v647_v48 = vadd.f32 %v646_v46, %v557_v44  ;;  %v321_v41 = vld [vmem:[#allocation2 + $0x60] sm:$0xff] }
 0x160   : > { %764 = vst [vmem:[#allocation2 + $0x90] sm:$0xff] %v732_v47  ;;  %v717_v49 = vadd.f32 %v647_v48, %v315_v45  ;;  %v337_v47 = vld [vmem:[#allocation2 + $0xa0] sm:$0xff] }
 0x162   : > { %749 = vst [vmem:[#allocation2 + $0x30] sm:$0xff] %v717_v49  ;;  %v597_v50 = vpop.f32.mrf.mxu2 }
 0x163   : > { %v686_v52 = vpop.f32.mrf.mxu3 }
 0x164   : > { %v687_v53 = vadd.f32 %v686_v52, %v597_v50  ;;  %v559_v54 = vpop.f32.mrf.mxu0 }
 0x165   : > { %v648_v56 = vpop.f32.mrf.mxu1 }
 0x166   : > { %v733_v57 = vadd.f32 %v687_v53, %v331_v51  ;;  %v649_v58 = vadd.f32 %v648_v56, %v559_v54  ;;  %v322_v51 = vld [vmem:[#allocation2 + $0xf0] sm:$0xff] }
 0x168   : > { %765 = vst [vmem:[#allocation2 + $0x70] sm:$0xff] %v733_v57  ;;  %v718_v59 = vadd.f32 %v649_v58, %v316_v55  ;;  %v338_v57 = vld [vmem:[#allocation2 + $0xf8] sm:$0xff] }
 0x16a   : > { %750 = vst [vmem:[#allocation2 + $0x48] sm:$0xff] %v718_v59  ;;  %v599_v60 = vpop.f32.mrf.mxu2 }
 0x16b   : > { %v688_v62 = vpop.f32.mrf.mxu3 }
 0x16c   : > { %v689_v63 = vadd.f32 %v688_v62, %v599_v60  ;;  %v562_v0 = vpop.f32.mrf.mxu0 }
 0x16d   : > { %v651_v2 = vpop.f32.mrf.mxu1 }
 0x16e   : > { %v734_v3 = vadd.f32 %v689_v63, %v332_v61  ;;  %v652_v4 = vadd.f32 %v651_v2, %v562_v0  ;;  %v323_v61 = vld [vmem:[#allocation2 + $0x8] sm:$0xff] }
 0x170   : > { %766 = vst [vmem:[#allocation2 + $0xc0] sm:$0xff] %v734_v3  ;;  %v719_v5 = vadd.f32 %v652_v4, %v317_v1  ;;  %v339_v3 = vld [vmem:[#allocation2 + $0x20] sm:$0xff] }
 0x172   : > { %751 = vst [vmem:[#allocation2 + $0x80] sm:$0xff] %v719_v5  ;;  %v602_v6 = vpop.f32.mrf.mxu2 }
 0x173   : > { %v691_v8 = vpop.f32.mrf.mxu3 }
 0x174   : > { %v692_v9 = vadd.f32 %v691_v8, %v602_v6  ;;  %v564_v10 = vpop.f32.mrf.mxu0 }
 0x175   : > { %v653_v12 = vpop.f32.mrf.mxu1 }
 0x176   : > { %v735_v13 = vadd.f32 %v692_v9, %v333_v7  ;;  %v654_v14 = vadd.f32 %v653_v12, %v564_v10  ;;  %v324_v7 = vld [vmem:[#allocation2 + $0x78] sm:$0xff] }
 0x178   : > { %767 = vst [vmem:[#allocation2 + $0xa8] sm:$0xff] %v735_v13  ;;  %v720_v15 = vadd.f32 %v654_v14, %v318_v11  ;;  %v340_v13 = vld [vmem:[#allocation2 + $0x98] sm:$0xff] }
 0x17a   : > { %752 = vst [vmem:[#allocation2 + $0x88] sm:$0xff] %v720_v15  ;;  %v604_v16 = vpop.f32.mrf.mxu2 }
 0x17b   : > { %v693_v18 = vpop.f32.mrf.mxu3 }
 0x17c   : > { %v694_v19 = vadd.f32 %v693_v18, %v604_v16  ;;  %v567_v20 = vpop.f32.mrf.mxu0 }
 0x17d   : > { %v656_v22 = vpop.f32.mrf.mxu1 }
 0x17e   : > { %v736_v23 = vadd.f32 %v694_v19, %v334_v17  ;;  %v657_v24 = vadd.f32 %v656_v22, %v567_v20 }
 0x180   : > { %768 = vst [vmem:[#allocation2 + $0xd0] sm:$0xff] %v736_v23  ;;  %v721_v25 = vadd.f32 %v657_v24, %v319_v21 }
 0x182   : > { %753 = vst [vmem:[#allocation2 + $0xe8] sm:$0xff] %v721_v25  ;;  %v607_v26 = vpop.f32.mrf.mxu2 }
 0x183   : > { %v696_v28 = vpop.f32.mrf.mxu3 }
 0x184   : > { %v697_v29 = vadd.f32 %v696_v28, %v607_v26  ;;  %v569_v30 = vpop.f32.mrf.mxu0 }
 0x185   : > { %v658_v32 = vpop.f32.mrf.mxu1 }
 0x186   : > { %v737_v33 = vadd.f32 %v697_v29, %v335_v27  ;;  %v659_v34 = vadd.f32 %v658_v32, %v569_v30 }
 0x188   : > { %769 = vst [vmem:[#allocation2 + $0x10] sm:$0xff] %v737_v33  ;;  %v722_v35 = vadd.f32 %v659_v34, %v320_v31 }
 0x18a   : > { %754 = vst [vmem:[#allocation2 + $0xb8] sm:$0xff] %v722_v35  ;;  %v609_v36 = vpop.f32.mrf.mxu2 }
 0x18b   : > { %v698_v38 = vpop.f32.mrf.mxu3 }
 0x18c   : > { %v699_v39 = vadd.f32 %v698_v38, %v609_v36  ;;  %v572_v40 = vpop.f32.mrf.mxu0 }
 0x18d   : > { %v661_v42 = vpop.f32.mrf.mxu1 }
 0x18e   : > { %v738_v43 = vadd.f32 %v699_v39, %v336_v37  ;;  %v662_v44 = vadd.f32 %v661_v42, %v572_v40 }
 0x190   : > { %770 = vst [vmem:[#allocation2 + $0x28] sm:$0xff] %v738_v43  ;;  %v723_v45 = vadd.f32 %v662_v44, %v321_v41 }
 0x192   : > { %755 = vst [vmem:[#allocation2 + $0x60] sm:$0xff] %v723_v45  ;;  %v612_v46 = vpop.f32.mrf.mxu2 }
 0x193   : > { %v701_v48 = vpop.f32.mrf.mxu3 }
 0x194   : > { %v702_v49 = vadd.f32 %v701_v48, %v612_v46  ;;  %v574_v50 = vpop.f32.mrf.mxu0 }
 0x195   : > { %v663_v52 = vpop.f32.mrf.mxu1 }
 0x196   : > { %v739_v53 = vadd.f32 %v702_v49, %v337_v47  ;;  %v664_v54 = vadd.f32 %v663_v52, %v574_v50 }
 0x198   : > { %771 = vst [vmem:[#allocation2 + $0xa0] sm:$0xff] %v739_v53  ;;  %v724_v55 = vadd.f32 %v664_v54, %v322_v51 }
 0x19a   : > { %756 = vst [vmem:[#allocation2 + $0xf0] sm:$0xff] %v724_v55  ;;  %v614_v56 = vpop.f32.mrf.mxu2 }
 0x19b   : > { %v703_v58 = vpop.f32.mrf.mxu3 }
 0x19c   : > { %v704_v59 = vadd.f32 %v703_v58, %v614_v56  ;;  %v577_v60 = vpop.f32.mrf.mxu0 }
 0x19d   : > { %v666_v62 = vpop.f32.mrf.mxu1 }
 0x19e   : > { %v740_v63 = vadd.f32 %v704_v59, %v338_v57  ;;  %v667_v0 = vadd.f32 %v666_v62, %v577_v60 }
 0x1a0   : > { %772 = vst [vmem:[#allocation2 + $0xf8] sm:$0xff] %v740_v63  ;;  %v725_v1 = vadd.f32 %v667_v0, %v323_v61 }
 0x1a2   : > { %757 = vst [vmem:[#allocation2 + $0x8] sm:$0xff] %v725_v1  ;;  %v617_v2 = vpop.f32.mrf.mxu2 }
 0x1a3   : > { %v706_v4 = vpop.f32.mrf.mxu3 }
 0x1a4   : > { %v707_v5 = vadd.f32 %v706_v4, %v617_v2  ;;  %v579_v6 = vpop.f32.mrf.mxu0 }
 0x1a5   : > { %v668_v8 = vpop.f32.mrf.mxu1 }
 0x1a6   : > { %v741_v9 = vadd.f32 %v707_v5, %v339_v3  ;;  %v669_v10 = vadd.f32 %v668_v8, %v579_v6 }
 0x1a8   : > { %773 = vst [vmem:[#allocation2 + $0x20] sm:$0xff] %v741_v9  ;;  %v726_v11 = vadd.f32 %v669_v10, %v324_v7 }
 0x1aa   : > { %758 = vst [vmem:[#allocation2 + $0x78] sm:$0xff] %v726_v11  ;;  %v619_v12 = vpop.f32.mrf.mxu2 }
 0x1ab   : > { %v708_v14 = vpop.f32.mrf.mxu3 }
 0x1ac   : > { %v709_v15 = vadd.f32 %v708_v14, %v619_v12 }
 0x1ae   : > { %v742_v16 = vadd.f32 %v709_v15, %v340_v13 }
 0x1b0   : > { %774 = vst [vmem:[#allocation2 + $0x98] sm:$0xff] %v742_v16 }
 0x1b1 PF: > { %p1078_p11 = scmp.ne.s32.totalorder %s1505_s27, 1 }
 0x1b3   : > { %778 = sbr.rel (%p1078_p11) target bundleno = 480 (0x1e0), region = 48 }
 0x1b8   : > { %v779_v17 = vld [vmem:[#allocation2 + $0xb0] sm:$0xff]  ;;  %v780_v18 = vld [vmem:[#allocation2] sm:$0xff]  ;;  %v781_v19 = vld [vmem:[#allocation2 + $0xd8] sm:$0xff] }
 0x1b9   : > { %1245 = vtanh.f32 %v779_v17  ;;  %v782_v20 = vld [vmem:[#allocation2 + $0x18] sm:$0xff]  ;;  %v783_v21 = vld [vmem:[#allocation2 + $0x50] sm:$0xff]  ;;  %v784_v22 = vld [vmem:[#allocation2 + $0x68] sm:$0xff] }
 0x1ba   : > { %1247 = vtanh.f32 %v780_v18  ;;  %v785_v23 = vld [vmem:[#allocation2 + $0x30] sm:$0xff]  ;;  %v786_v24 = vld [vmem:[#allocation2 + $0x48] sm:$0xff]  ;;  %v787_v25 = vld [vmem:[#allocation2 + $0x80] sm:$0xff] }
 0x1bb   : > { %1249 = vtanh.f32 %v781_v19  ;;  %v788_v27 = vld [vmem:[#allocation2 + $0x88] sm:$0xff]  ;;  %v790_v31 = vld [vmem:[#allocation2 + $0xb8] sm:$0xff]  ;;  %v791_v33 = vld [vmem:[#allocation2 + $0x60] sm:$0xff] }
 0x1bc   : > { %1251 = vtanh.f32 %v782_v20  ;;  %v789_v29 = vld [vmem:[#allocation2 + $0xe8] sm:$0xff]  ;;  %v792_v35 = vld [vmem:[#allocation2 + $0xf0] sm:$0xff]  ;;  %v794_v39 = vld [vmem:[#allocation2 + $0x78] sm:$0xff] }
 0x1bd   : > { %1253 = vtanh.f32 %v783_v21  ;;  %v793_v37 = vld [vmem:[#allocation2 + $0x8] sm:$0xff]  ;;  %v795_v41 = vld [vmem:[#allocation2 + $0x38] sm:$0xff]  ;;  %v797_v45 = vld [vmem:[#allocation2 + $0x40] sm:$0xff] }
 0x1be   : > { %1255 = vtanh.f32 %v784_v22  ;;  %v796_v43 = vld [vmem:[#allocation2 + $0x58] sm:$0xff]  ;;  %v798_v47 = vld [vmem:[#allocation2 + $0xc8] sm:$0xff]  ;;  %v799_v49 = vld [vmem:[#allocation2 + $0xe0] sm:$0xff] }
 0x1bf   : > { %v1246_v26 = vpop.eup %1245  ;;  %1257 = vtanh.f32 %v785_v23  ;;  %v800_v51 = vld [vmem:[#allocation2 + $0x90] sm:$0xff]  ;;  %v802_v55 = vld [vmem:[#allocation2 + $0xc0] sm:$0xff]  ;;  %v803_v57 = vld [vmem:[#allocation2 + $0xa8] sm:$0xff] }
 0x1c0   : > { %v1248_v28 = vpop.eup %1247  ;;  %843 = vst [vmem:[%s1735_s15] sm:$0xff] %v1246_v26  ;;  %1259 = vtanh.f32 %v786_v24  ;;  %v801_v53 = vld [vmem:[#allocation2 + $0x70] sm:$0xff]  ;;  %v806_v63 = vld [vmem:[#allocation2 + $0x28] sm:$0xff]  ;;  %v807_v1 = vld [vmem:[#allocation2 + $0xa0] sm:$0xff] }
 0x1c1   : > { %v1250_v30 = vpop.eup %1249  ;;  %844 = vst [vmem:[%s1735_s15 + $0x8] sm:$0xff] %v1248_v28  ;;  %1261 = vtanh.f32 %v787_v25  ;;  %v804_v59 = vld [vmem:[#allocation2 + $0xd0] sm:$0xff]  ;;  %v808_v3 = vld [vmem:[#allocation2 + $0xf8] sm:$0xff]  ;;  %v809_v5 = vld [vmem:[#allocation2 + $0x20] sm:$0xff] }
 0x1c2   : > { %v1252_v32 = vpop.eup %1251  ;;  %845 = vst [vmem:[%s1735_s15 + $0x10] sm:$0xff] %v1250_v30  ;;  %1263 = vtanh.f32 %v788_v27  ;;  %v805_v61 = vld [vmem:[#allocation2 + $0x10] sm:$0xff]  ;;  %v810_v7 = vld [vmem:[#allocation2 + $0x98] sm:$0xff] }
 0x1c3   : > { %v1254_v34 = vpop.eup %1253  ;;  %846 = vst [vmem:[%s1735_s15 + $0x18] sm:$0xff] %v1252_v32  ;;  %1265 = vtanh.f32 %v789_v29 }
 0x1c4   : > { %v1256_v36 = vpop.eup %1255  ;;  %847 = vst [vmem:[%s1735_s15 + $0x20] sm:$0xff] %v1254_v34  ;;  %1267 = vtanh.f32 %v790_v31 }
 0x1c5   : > { %v1258_v38 = vpop.eup %1257  ;;  %848 = vst [vmem:[%s1735_s15 + $0x28] sm:$0xff] %v1256_v36  ;;  %1269 = vtanh.f32 %v791_v33 }
 0x1c6   : > { %v1260_v40 = vpop.eup %1259  ;;  %849 = vst [vmem:[%s1735_s15 + $0x30] sm:$0xff] %v1258_v38  ;;  %1271 = vtanh.f32 %v792_v35 }
 0x1c7   : > { %v1262_v42 = vpop.eup %1261  ;;  %850 = vst [vmem:[%s1735_s15 + $0x38] sm:$0xff] %v1260_v40  ;;  %1273 = vtanh.f32 %v793_v37 }
 0x1c8   : > { %v1264_v44 = vpop.eup %1263  ;;  %851 = vst [vmem:[%s1735_s15 + $0x40] sm:$0xff] %v1262_v42  ;;  %1275 = vtanh.f32 %v794_v39 }
 0x1c9   : > { %v1266_v46 = vpop.eup %1265  ;;  %852 = vst [vmem:[%s1735_s15 + $0x48] sm:$0xff] %v1264_v44  ;;  %1277 = vtanh.f32 %v795_v41 }
 0x1ca   : > { %v1268_v48 = vpop.eup %1267  ;;  %853 = vst [vmem:[%s1735_s15 + $0x50] sm:$0xff] %v1266_v46  ;;  %1279 = vtanh.f32 %v796_v43 }
 0x1cb   : > { %v1270_v50 = vpop.eup %1269  ;;  %854 = vst [vmem:[%s1735_s15 + $0x58] sm:$0xff] %v1268_v48  ;;  %1281 = vtanh.f32 %v797_v45 }
 0x1cc   : > { %v1272_v52 = vpop.eup %1271  ;;  %855 = vst [vmem:[%s1735_s15 + $0x60] sm:$0xff] %v1270_v50  ;;  %1283 = vtanh.f32 %v798_v47 }
 0x1cd   : > { %v1274_v54 = vpop.eup %1273  ;;  %856 = vst [vmem:[%s1735_s15 + $0x68] sm:$0xff] %v1272_v52  ;;  %1285 = vtanh.f32 %v799_v49 }
 0x1ce   : > { %v1276_v56 = vpop.eup %1275  ;;  %857 = vst [vmem:[%s1735_s15 + $0x70] sm:$0xff] %v1274_v54  ;;  %1287 = vtanh.f32 %v800_v51 }
 0x1cf   : > { %v1278_v58 = vpop.eup %1277  ;;  %858 = vst [vmem:[%s1735_s15 + $0x78] sm:$0xff] %v1276_v56  ;;  %1289 = vtanh.f32 %v801_v53 }
 0x1d0   : > { %v1280_v60 = vpop.eup %1279  ;;  %859 = vst [vmem:[%s1735_s15 + $0x80] sm:$0xff] %v1278_v58  ;;  %1291 = vtanh.f32 %v802_v55 }
 0x1d1   : > { %v1282_v62 = vpop.eup %1281  ;;  %860 = vst [vmem:[%s1735_s15 + $0x88] sm:$0xff] %v1280_v60  ;;  %1293 = vtanh.f32 %v803_v57 }
 0x1d2   : > { %v1284_v0 = vpop.eup %1283  ;;  %861 = vst [vmem:[%s1735_s15 + $0x90] sm:$0xff] %v1282_v62  ;;  %1295 = vtanh.f32 %v804_v59 }
 0x1d3   : > { %v1286_v2 = vpop.eup %1285  ;;  %862 = vst [vmem:[%s1735_s15 + $0x98] sm:$0xff] %v1284_v0  ;;  %1297 = vtanh.f32 %v805_v61 }
 0x1d4   : > { %v1288_v4 = vpop.eup %1287  ;;  %863 = vst [vmem:[%s1735_s15 + $0xa0] sm:$0xff] %v1286_v2  ;;  %1299 = vtanh.f32 %v806_v63 }
 0x1d5   : > { %v1290_v6 = vpop.eup %1289  ;;  %864 = vst [vmem:[%s1735_s15 + $0xa8] sm:$0xff] %v1288_v4  ;;  %1301 = vtanh.f32 %v807_v1 }
 0x1d6   : > { %v1292_v8 = vpop.eup %1291  ;;  %865 = vst [vmem:[%s1735_s15 + $0xb0] sm:$0xff] %v1290_v6  ;;  %1303 = vtanh.f32 %v808_v3 }
 0x1d7   : > { %v1294_v9 = vpop.eup %1293  ;;  %866 = vst [vmem:[%s1735_s15 + $0xb8] sm:$0xff] %v1292_v8  ;;  %1305 = vtanh.f32 %v809_v5 }
 0x1d8   : > { %v1296_v10 = vpop.eup %1295  ;;  %867 = vst [vmem:[%s1735_s15 + $0xc0] sm:$0xff] %v1294_v9  ;;  %1307 = vtanh.f32 %v810_v7 }
 0x1d9   : > { %v1298_v11 = vpop.eup %1297  ;;  %868 = vst [vmem:[%s1735_s15 + $0xc8] sm:$0xff] %v1296_v10 }
 0x1da   : > { %v1300_v12 = vpop.eup %1299  ;;  %869 = vst [vmem:[%s1735_s15 + $0xd0] sm:$0xff] %v1298_v11 }
 0x1db   : > { %v1302_v13 = vpop.eup %1301  ;;  %870 = vst [vmem:[%s1735_s15 + $0xd8] sm:$0xff] %v1300_v12 }
 0x1dc   : > { %v1304_v14 = vpop.eup %1303  ;;  %871 = vst [vmem:[%s1735_s15 + $0xe0] sm:$0xff] %v1302_v13 }
 0x1dd   : > { %v1306_v15 = vpop.eup %1305  ;;  %872 = vst [vmem:[%s1735_s15 + $0xe8] sm:$0xff] %v1304_v14 }
 0x1de   : > { %v1308_v16 = vpop.eup %1307  ;;  %873 = vst [vmem:[%s1735_s15 + $0xf0] sm:$0xff] %v1306_v15 }
 0x1df   : > { %874 = vst [vmem:[%s1735_s15 + $0xf8] sm:$0xff] %v1308_v16 }
 0x1e0 PF: > { %s1101_s27 = sshll.u32 %s1509_s28, 8  ;;  %s888_s19 = sshll.u32 %s1735_s15, 4  ;;  %s889_s19 = int_to_ptr.vmem [resolvable:$true] %s888_s19 }
 0x1e1   : > { %s887_s12 = scalar_lea.hbm %s1914_s4, %s1101_s27  ;;  %s876_s7 = scalar_lea.sflag [#allocation8], %s219_s23 }
 0x1e2   : > { %s890_s17 = sshll.u32 %s887_s12, 4  ;;  %s1413_s28 = scalar_lea.hbm %s1914_s4, 512  ;;  %s891_s17 = int_to_ptr.hbm [resolvable:$true] %s890_s17 }
 0x1e3   : > { %s1407_s22 = sshra.s32 %s891_s17, 4  ;;  %s1408_s22 = int_to_ptr.hbm [resolvable:$true] %s1407_s22 }
 0x1e4   : > { %s1409_s16 = scalar_lea.hbm %s1408_s22, 256  ;;  %p1414_p4 = scmp.lt.s32.totalorder %s1408_s22, %s1914_s4 }
 0x1e5   : > { %p1410_p12 = scmp.ne.s32.totalorder %s1408_s22, %s1409_s16  ;;  %p1415_p5 = scmp.lt.s32.totalorder %s1413_s28, %s1409_s16 }
 0x1e7   : > { %p1411_p0 = pnand %p1410_p12, %p1635_p7  ;;  %p1416_p6 = por %p1415_p5, %p1414_p4 }
 0x1e9   : > { %p1412_p2 = pneg %p1411_p0 }
 0x1eb   : > { %p1417_p8 = pnand %p1416_p6, %p1412_p2 }
 0x1ed   : > { %1420 = shalt.err (!%p1417_p8)
}
 0x1ee   : > { %s1532_s23 = smov 128   ;;  %s1533_s15 = smov 8  }
 0x1ef   : > { %1126 = dma.vmem_to_hbm [thread:$0]  (%p1635_p7), %s889_s19, 4096, %s891_s17, %s876_s7, %s1532_s23, %s1532_s23, %s1533_s15  }
 0x1f0 PF: > { %s1939_s9 = sld [smem:[#allocation18_spill]]  ;;  %p1145_p10 = scmp.ge.s32.totalorder %s1521_s5, 2 }
 0x1f2   : > { %p1139_p13 = pnand %p1145_p10, %p1640_p9 }
 0x1f4   : > { %p1140_p1 = pneg %p1139_p13 }
 0x1f6   : > { %s905_s21 = sand.u32 1, %s1939_s9  }
 0x1f7   : > { %s906_s2 = scalar_lea.sflag [#allocation8], %s905_s21 }
 0x1f8   : > { %1476 = dma.done.wait (%p1140_p1), %s906_s2, 4096  }
 0x1f9   : > { %1478 = vsyncadd (%p1140_p1), %s906_s2, 4294963200  ;;  %s34_s5 = sadd.s32 1, %s1521_s5   ;;  %s1941_s6 = sld [smem:[#allocation19_spill]] }
 0x1fa   : > { %p31_p3 = scmp.ge.s32.totalorder %s34_s5, 6   ;;  %s1942_s24 = sld [smem:[#allocation24_spill]] }
 0x1fb   : > { %s1943_s10 = sld [smem:[#allocation25_spill]]  ;;  %s1947_s23 = smov %s1485_s0 }
 0x1fc   : > { %s1944_s27 = sld [smem:[#allocation20_spill]]  ;;  %s1949_s1 = smov %s1497_s25 }
 0x1fd   : > { %s1945_s29 = sld [smem:[#allocation22_spill]]  ;;  %s1950_s25 = smov %s1501_s26 }
 0x1fe   : > { %s1946_s20 = sld [smem:[#allocation23_spill]]  ;;  %s1952_s28 = smov %s1517_s30 }
 0x1ff   : > { %s1948_s0 = smov %s1941_s6 }
 0x200   :  { %33 = sbr.rel (!%p31_p3) target bundleno = 18 (0x12), region = 91 }
 0x201   : > { %s1951_s26 = smov %s1943_s10 }
 0x204   : > { %s1953_s30 = smov %s1946_s20 }
 0x205   :  { %912 = vsyncpa [#allocation7], 1 }
 0x206   :  { %914 = vsyncpa [#allocation7 + $0x1], 1 }
 0x207   :  { %915 = vsyncpa [#allocation10], 1 }
 0x208   :  { %917 = vsyncpa [#allocation10 + $0x1], 1 }
 0x209   :  { %918 = vsyncpa [#allocation8], 1 }
 0x20a   :  { %920 = vsyncpa [#allocation8 + $0x1], 1 }

</bundles_post_ra>
